<compile_context>
chip_gen: v5e
topology: v5e:2x2
jax: 0.10.0
libtpu: 0.0.40
codegen_flags: <defaults>
</compile_context>

<pallas_src>
import functools

import jax
import jax.numpy as jnp
from jax.experimental import pallas as pl
from jax.experimental.pallas import tpu as pltpu

LANE_PAD = 128      # pad feature dims to MXU/lane width
MAX_TILE_ROWS = 512 # rows per grid step (sublane-aligned, amortizes MXU fill/drain)


def _fused_mlp_kernel(x_ref, w_ref, b_ref, o_ref):
    """h = x (lane-padded in VMEM); for each layer: h = sigmoid(h @ W_l + b_l)."""
    num_layers, pad_features, _ = w_ref.shape
    input_size = x_ref.shape[-1]
    compute_dtype = w_ref.dtype                      # bf16 on v6e/v7x, f32 otherwise

    h = x_ref[...].astype(jnp.float32)               # (TB, F_in)
    if input_size < pad_features:
        # Zero-fill to the 128-lane slab inside the kernel (no wrapper-side HBM round trip).
        h = jnp.pad(h, ((0, 0), (0, pad_features - input_size)))

    for l in range(num_layers):                      # static unroll (L is small)
        y = jnp.dot(h.astype(compute_dtype), w_ref[l],
                    preferred_element_type=jnp.float32)
        y = y + b_ref[l]                             # (1, P) f32 bias broadcast
        # sigmoid(y) == 0.5*tanh(0.5*y)+0.5: transcendental on EUP, padded lanes -> 0.5,
        # killed by zero weight rows of the next layer.
        h = 0.5 * jnp.tanh(0.5 * y) + 0.5
    o_ref[...] = h.astype(o_ref.dtype)               # lane-dense (TB, 128) store


def init_simple_nn_params(key, input_size, layers):
    """Deterministic params mirroring SimpleNN.__init__ shapes: list of (W, b), W is (in, out)."""
    params = []
    in_features = input_size
    dims = list(layers) + [1]                        # final Linear(in_features, 1)
    for out_features in dims:
        key, kw, kb = jax.random.split(key, 3)
        bound = 1.0 / jnp.sqrt(jnp.float32(in_features))   # torch.nn.Linear default init
        W = jax.random.uniform(kw, (in_features, out_features),
                               minval=-bound, maxval=bound, dtype=jnp.float32)
        b = jax.random.uniform(kb, (out_features,),
                               minval=-bound, maxval=bound, dtype=jnp.float32)
        params.append((W, b))
        in_features = out_features
    return params


def build_padded_params(params, pad=LANE_PAD, weight_dtype=jnp.float32):
    """Zero-pad every layer's (W, b) into stacked (L, P, P) / (L, 1, P) tensors (done once)."""
    num_layers = len(params)
    w_stack = jnp.zeros((num_layers, pad, pad), dtype=weight_dtype)
    b_stack = jnp.zeros((num_layers, 1, pad), dtype=jnp.float32)   # bias stays f32 (post-acc add)
    for l, (W, b) in enumerate(params):
        f_in, f_out = W.shape
        assert f_in <= pad and f_out <= pad, "feature dim exceeds pad width"
        w_stack = w_stack.at[l, :f_in, :f_out].set(W.astype(weight_dtype))
        b_stack = b_stack.at[l, 0, :f_out].set(b)
    return w_stack, b_stack


@functools.partial(jax.jit, static_argnames=("out_features",))
def simple_nn_forward(x, w_stack, b_stack, *, out_features=1):
    """Fused forward pass: one pallas_call for the whole MLP, batch-tiled grid."""
    B, input_size = x.shape
    L, P, _ = w_stack.shape

    # Rows per grid step: full batch if small, else 512-row tiles (sublane multiple of 8).
    TB = B if B <= MAX_TILE_ROWS else MAX_TILE_ROWS
    grid = (pl.cdiv(B, TB),)

    out_pad = pl.pallas_call(
        _fused_mlp_kernel,
        out_shape=jax.ShapeDtypeStruct((B, P), jnp.float32),
        grid=grid,
        in_specs=[
            # x: unpadded (TB, input_size) tile; last dim equals full array extent -> legal.
            pl.BlockSpec((TB, input_size), lambda i: (i, 0)),
            # weights / biases: constant index_map -> fetched once, VMEM-resident across steps.
            pl.BlockSpec((L, P, P), lambda i: (0, 0, 0)),
            pl.BlockSpec((L, 1, P), lambda i: (0, 0, 0)),
        ],
        out_specs=pl.BlockSpec((TB, P), lambda i: (i, 0)),
        compiler_params=pltpu.CompilerParams(
            dimension_semantics=("parallel",),   # shards batch tiles across TCs on v7x
        ),
    )(x, w_stack, b_stack)

    # Lane-dense kernel output; slice the real output feature inside the same jit (XLA fuses).
    return out_pad[:, :out_features]


def simple_nn_reference(x, params):
    """Pure-JAX reference for correctness check (unpadded f32 math)."""
    for (W, b) in params:
        x = jax.nn.sigmoid(x @ W + b)
    return x


if __name__ == "__main__":
    key = jax.random.PRNGKey(0)
    kx, kp = jax.random.split(key)

    batch = 8
    input_size = 32
    hidden_layers = [32, 16]

    # bf16 MXU operands on v6e/v7x (f32 accumulate); f32 end-to-end on v5e and older.
    kind = jax.devices()[0].device_kind.lower()
    use_bf16 = ("v6" in kind) or ("v7" in kind)
    weight_dtype = jnp.bfloat16 if use_bf16 else jnp.float32

    x = jax.random.normal(kx, (batch, input_size), dtype=jnp.float32)
    params = init_simple_nn_params(kp, input_size, hidden_layers)
    w_stack, b_stack = build_padded_params(params, weight_dtype=weight_dtype)

    out = simple_nn_forward(x, w_stack, b_stack, out_features=1)
    out = jax.block_until_ready(out)

    ref = simple_nn_reference(x, params)
    assert out.shape == (batch, 1), out.shape
    tol = 1e-2 if use_bf16 else 1e-5
    assert jnp.allclose(out, ref, atol=tol, rtol=tol), (out, ref)

    print("KERNEL_OK")
</pallas_src>

<mosaic_0001>
module attributes {stable_mosaic.version = 11 : i64} {
  func.func @_fused_mlp_kernel(%arg0: i32, %arg1: memref<8x32xf32, #tpu.memory_space<vmem>>, %arg2: memref<3x128x128xf32, #tpu.memory_space<vmem>>, %arg3: memref<3x1x128xf32, #tpu.memory_space<vmem>>, %arg4: memref<8x128xf32, #tpu.memory_space<vmem>>) attributes {dimension_semantics = [#tpu.dimension_semantics<parallel>], iteration_bounds = array<i64: 1>, scalar_prefetch = 0 : i64, scratch_operands = 0 : i64, tpu.core_type = #tpu.core_type<tc>, window_params = [{transform_indices = @transform_0, window_bounds = array<i64: 8, 32>}, {pipeline_mode = #tpu.pipeline_mode<synchronous>, transform_indices = @transform_1, window_bounds = array<i64: 3, 128, 128>}, {pipeline_mode = #tpu.pipeline_mode<synchronous>, transform_indices = @transform_2, window_bounds = array<i64: 3, 1, 128>}, {transform_indices = @transform_3, window_bounds = array<i64: 8, 128>}]} {
    %c0 = arith.constant 0 : index
    %c0_0 = arith.constant 0 : index
    %0 = vector.load %arg1[%c0, %c0_0] : memref<8x32xf32, #tpu.memory_space<vmem>>, vector<8x32xf32>
    %c0_i32 = arith.constant 0 : i32
    %1 = arith.sitofp %c0_i32 : i32 to f32
    %2 = vector.broadcast %1 : f32 to vector<8x96xf32>
    %3 = tpu.concatenate %0, %2 in 1 : vector<8x32xf32>, vector<8x96xf32> -> vector<8x128xf32>
    %c0_1 = arith.constant 0 : index
    %c0_2 = arith.constant 0 : index
    %c0_3 = arith.constant 0 : index
    %4 = vector.load %arg2[%c0_1, %c0_2, %c0_3] : memref<3x128x128xf32, #tpu.memory_space<vmem>>, vector<1x128x128xf32>
    %5 = vector.shape_cast %4 : vector<1x128x128xf32> to vector<128x128xf32>
    %cst = arith.constant dense<0.000000e+00> : vector<8x128xf32>
    %6 = tpu.matmul %3, %5, %cst {dimension_numbers = #tpu.dot_dimension_numbers<[1], [0], [0], [1], [0, 0, 1, 1], [], []>} : vector<8x128xf32>, vector<128x128xf32>, vector<8x128xf32> -> vector<8x128xf32>
    %c0_4 = arith.constant 0 : index
    %c0_5 = arith.constant 0 : index
    %c0_6 = arith.constant 0 : index
    %7 = vector.load %arg3[%c0_4, %c0_5, %c0_6] : memref<3x1x128xf32, #tpu.memory_space<vmem>>, vector<1x1x128xf32>
    %8 = vector.shape_cast %7 : vector<1x1x128xf32> to vector<1x128xf32>
    %9 = vector.broadcast %8 : vector<1x128xf32> to vector<8x128xf32>
    %10 = arith.addf %6, %9 : vector<8x128xf32>
    %cst_7 = arith.constant 5.000000e-01 : f32
    %11 = vector.broadcast %cst_7 : f32 to vector<8x128xf32>
    %12 = arith.mulf %11, %10 : vector<8x128xf32>
    %13 = math.tanh %12 : vector<8x128xf32>
    %cst_8 = arith.constant 5.000000e-01 : f32
    %14 = vector.broadcast %cst_8 : f32 to vector<8x128xf32>
    %15 = arith.mulf %14, %13 : vector<8x128xf32>
    %cst_9 = arith.constant 5.000000e-01 : f32
    %16 = vector.broadcast %cst_9 : f32 to vector<8x128xf32>
    %17 = arith.addf %15, %16 : vector<8x128xf32>
    %c1 = arith.constant 1 : index
    %c0_10 = arith.constant 0 : index
    %c0_11 = arith.constant 0 : index
    %18 = vector.load %arg2[%c1, %c0_10, %c0_11] : memref<3x128x128xf32, #tpu.memory_space<vmem>>, vector<1x128x128xf32>
    %19 = vector.shape_cast %18 : vector<1x128x128xf32> to vector<128x128xf32>
    %cst_12 = arith.constant dense<0.000000e+00> : vector<8x128xf32>
    %20 = tpu.matmul %17, %19, %cst_12 {dimension_numbers = #tpu.dot_dimension_numbers<[1], [0], [0], [1], [0, 0, 1, 1], [], []>} : vector<8x128xf32>, vector<128x128xf32>, vector<8x128xf32> -> vector<8x128xf32>
    %c1_13 = arith.constant 1 : index
    %c0_14 = arith.constant 0 : index
    %c0_15 = arith.constant 0 : index
    %21 = vector.load %arg3[%c1_13, %c0_14, %c0_15] : memref<3x1x128xf32, #tpu.memory_space<vmem>>, vector<1x1x128xf32>
    %22 = vector.shape_cast %21 : vector<1x1x128xf32> to vector<1x128xf32>
    %23 = vector.broadcast %22 : vector<1x128xf32> to vector<8x128xf32>
    %24 = arith.addf %20, %23 : vector<8x128xf32>
    %cst_16 = arith.constant 5.000000e-01 : f32
    %25 = vector.broadcast %cst_16 : f32 to vector<8x128xf32>
    %26 = arith.mulf %25, %24 : vector<8x128xf32>
    %27 = math.tanh %26 : vector<8x128xf32>
    %cst_17 = arith.constant 5.000000e-01 : f32
    %28 = vector.broadcast %cst_17 : f32 to vector<8x128xf32>
    %29 = arith.mulf %28, %27 : vector<8x128xf32>
    %cst_18 = arith.constant 5.000000e-01 : f32
    %30 = vector.broadcast %cst_18 : f32 to vector<8x128xf32>
    %31 = arith.addf %29, %30 : vector<8x128xf32>
    %c2 = arith.constant 2 : index
    %c0_19 = arith.constant 0 : index
    %c0_20 = arith.constant 0 : index
    %32 = vector.load %arg2[%c2, %c0_19, %c0_20] : memref<3x128x128xf32, #tpu.memory_space<vmem>>, vector<1x128x128xf32>
    %33 = vector.shape_cast %32 : vector<1x128x128xf32> to vector<128x128xf32>
    %cst_21 = arith.constant dense<0.000000e+00> : vector<8x128xf32>
    %34 = tpu.matmul %31, %33, %cst_21 {dimension_numbers = #tpu.dot_dimension_numbers<[1], [0], [0], [1], [0, 0, 1, 1], [], []>} : vector<8x128xf32>, vector<128x128xf32>, vector<8x128xf32> -> vector<8x128xf32>
    %c2_22 = arith.constant 2 : index
    %c0_23 = arith.constant 0 : index
    %c0_24 = arith.constant 0 : index
    %35 = vector.load %arg3[%c2_22, %c0_23, %c0_24] : memref<3x1x128xf32, #tpu.memory_space<vmem>>, vector<1x1x128xf32>
    %36 = vector.shape_cast %35 : vector<1x1x128xf32> to vector<1x128xf32>
    %37 = vector.broadcast %36 : vector<1x128xf32> to vector<8x128xf32>
    %38 = arith.addf %34, %37 : vector<8x128xf32>
    %cst_25 = arith.constant 5.000000e-01 : f32
    %39 = vector.broadcast %cst_25 : f32 to vector<8x128xf32>
    %40 = arith.mulf %39, %38 : vector<8x128xf32>
    %41 = math.tanh %40 : vector<8x128xf32>
    %cst_26 = arith.constant 5.000000e-01 : f32
    %42 = vector.broadcast %cst_26 : f32 to vector<8x128xf32>
    %43 = arith.mulf %42, %41 : vector<8x128xf32>
    %cst_27 = arith.constant 5.000000e-01 : f32
    %44 = vector.broadcast %cst_27 : f32 to vector<8x128xf32>
    %45 = arith.addf %43, %44 : vector<8x128xf32>
    %c0_28 = arith.constant 0 : index
    %c0_29 = arith.constant 0 : index
    %46 = vector.load %arg4[%c0_28, %c0_29] : memref<8x128xf32, #tpu.memory_space<vmem>>, vector<8x128xf32>
    tpu.vector_store %arg4[%c0_28, %c0_29], %45 {strides = array<i32>} : memref<8x128xf32, #tpu.memory_space<vmem>>, vector<8x128xf32>,
    return
  }
  func.func @transform_0(%arg0: i32) -> (i32, i32) {
    %c0_i32 = arith.constant 0 : i32
    %c0_i32_0 = arith.constant 0 : i32
    return %arg0, %c0_i32 : i32, i32
  }
  func.func @transform_1(%arg0: i32) -> (i32, i32, i32) {
    %c0_i32 = arith.constant 0 : i32
    %c0_i32_0 = arith.constant 0 : i32
    %c0_i32_1 = arith.constant 0 : i32
    %c0_i32_2 = arith.constant 0 : i32
    return %c0_i32, %c0_i32_0, %c0_i32_1 : i32, i32, i32
  }
  func.func @transform_2(%arg0: i32) -> (i32, i32, i32) {
    %c0_i32 = arith.constant 0 : i32
    %c0_i32_0 = arith.constant 0 : i32
    %c0_i32_1 = arith.constant 0 : i32
    %c0_i32_2 = arith.constant 0 : i32
    return %c0_i32, %c0_i32_0, %c0_i32_1 : i32, i32, i32
  }
  func.func @transform_3(%arg0: i32) -> (i32, i32) {
    %c0_i32 = arith.constant 0 : i32
    %c0_i32_0 = arith.constant 0 : i32
    return %arg0, %c0_i32 : i32, i32
  }
}

</mosaic_0001>

<bundles_post_ra>
// kernel: simple_nn_forward.1
= control target key start
LH: loop header
LB: loop body
LE: loop exit
PB: predicated region body
PF: predicated region fallthrough
CT: control target
= control target key end

     0   :  { %8 = vsyncpa [#allocation3], 0  ;;  %s337_s0 = inlined_call_operand.hbm [shape: f32[8,32], index: 0, kind: input, shape index: {}]   ;;  %s338_s1 = inlined_call_operand.hbm [shape: f32[3,128,128], index: 1, kind: input, shape index: {}]   ;;  %s339_s2 = inlined_call_operand.hbm [shape: f32[3,1,128], index: 2, kind: input, shape index: {}]   ;;  %s340_s3 = inlined_call_operand.vmem [shape: f32[8,128], index: 3, kind: output, shape index: {}]  }
   0x1   :  { %9 = vsyncpa [#allocation5], 0  ;;  %s25_s14 = sshll.u32 %s338_s1, 4  ;;  %s298_s15 = smov [#allocation4]   ;;  %s26_s14 = int_to_ptr.hbm [resolvable:$true] %s25_s14 }
   0x2   :  { %s27_s16 = sshll.u32 %s298_s15, 4  ;;  %s15_s19 = sshll.u32 %s337_s0, 4  ;;  %s28_s16 = int_to_ptr.vmem [resolvable:$true] %s27_s16  ;;  %s16_s19 = int_to_ptr.hbm [resolvable:$true] %s15_s19 }
   0x3   :  { %s299_s20 = smov 128   ;;  %s300_s21 = smov 8  }
   0x4   :  { %33 = dma.hbm_to_vmem [thread:$0]  %s26_s14, 6144, %s28_s16, [#allocation5], %s299_s20, %s299_s20, %s300_s21  }
   0x5   :  { %s301_s22 = smov [#allocation2]   ;;  %s38_s26 = sshll.u32 %s339_s2, 4  ;;  %s39_s26 = int_to_ptr.hbm [resolvable:$true] %s38_s26 }
   0x6   :  { %s17_s23 = sshll.u32 %s301_s22, 4  ;;  %s302_s1 = smov [#allocation6]   ;;  %s18_s23 = int_to_ptr.vmem [resolvable:$true] %s17_s23 }
   0x7   :  { %20 = dma.hbm_to_vmem [thread:$0]  %s16_s19, 128, %s18_s23, [#allocation3]  }
   0x8   :  { %s40_s27 = sshll.u32 %s302_s1, 4  ;;  %s303_s28 = smov 16   ;;  %s41_s27 = int_to_ptr.vmem [resolvable:$true] %s40_s27 }
   0x9   :  { %s304_s29 = smov 1  }
   0xa   :  { %46 = dma.hbm_to_vmem [thread:$0]  %s39_s26, 48, %s41_s27, [#allocation5], %s303_s28, %s303_s28, %s304_s29  }
   0xb   :  { %294 = dma.done.wait [#allocation3], 128  }
   0xc   :  { %295 = vsyncadd [#allocation3], 4294967168 }
   0xd   :  { %296 = dma.done.wait [#allocation5], 6192  }
   0xe   :  { %297 = vsyncadd [#allocation5], 4294961104  ;;  %v77_v0 = vld [vmem:[#allocation4 + $0x78] sm:$0xff]  ;;  %v76_v1 = vld [vmem:[#allocation4 + $0x70] sm:$0xff]  ;;  %vm60_vm0 = vcmask 261120  }
   0xf   :  { %82 = vmatpush.msra.mxu0 %v77_v0  ;;  %v75_v2 = vld [vmem:[#allocation4 + $0x68] sm:$0xff]  ;;  %v74_v3 = vld [vmem:[#allocation4 + $0x60] sm:$0xff]  ;;  %v122_v4 = vld [vmem:[#allocation4 + $0xf8] sm:$0xff] }
  0x10   :  { %v73_v5 = vld [vmem:[#allocation4 + $0x58] sm:$0xff]  ;;  %128 = vmatpush.msra.mxu1 %v122_v4  ;;  %v121_v6 = vld [vmem:[#allocation4 + $0xf0] sm:$0xff]  ;;  %v120_v7 = vld [vmem:[#allocation4 + $0xe8] sm:$0xff] }
  0x11   :  { %83 = vmatpush.msra.mxu0 %v76_v1  ;;  %v72_v8 = vld [vmem:[#allocation4 + $0x50] sm:$0xff]  ;;  %v119_v9 = vld [vmem:[#allocation4 + $0xe0] sm:$0xff]  ;;  %v71_v10 = vld [vmem:[#allocation4 + $0x48] sm:$0xff] }
  0x12   :  { %129 = vmatpush.msra.mxu1 %v121_v6  ;;  %v118_v11 = vld [vmem:[#allocation4 + $0xd8] sm:$0xff]  ;;  %v70_v12 = vld [vmem:[#allocation4 + $0x40] sm:$0xff]  ;;  %v117_v13 = vld [vmem:[#allocation4 + $0xd0] sm:$0xff] }
  0x13   :  { %84 = vmatpush.msra.mxu0 %v75_v2  ;;  %v69_v14 = vld [vmem:[#allocation4 + $0x38] sm:$0xff]  ;;  %v116_v15 = vld [vmem:[#allocation4 + $0xc8] sm:$0xff]  ;;  %v68_v16 = vld [vmem:[#allocation4 + $0x30] sm:$0xff] }
  0x14   :  { %130 = vmatpush.msra.mxu1 %v120_v7  ;;  %v115_v17 = vld [vmem:[#allocation4 + $0xc0] sm:$0xff]  ;;  %v67_v18 = vld [vmem:[#allocation4 + $0x28] sm:$0xff]  ;;  %v65_v20 = vld [vmem:[#allocation4 + $0x18] sm:$0xff] }
  0x15   :  { %85 = vmatpush.msra.mxu0 %v74_v3  ;;  %v66_v19 = vld [vmem:[#allocation4 + $0x20] sm:$0xff]  ;;  %v64_v21 = vld [vmem:[#allocation4 + $0x10] sm:$0xff]  ;;  %v63_v22 = vld [vmem:[#allocation4 + $0x8] sm:$0xff] }
  0x16   :  { %131 = vmatpush.msra.mxu1 %v119_v9  ;;  %v62_v23 = vld [vmem:[#allocation4] sm:$0xff]  ;;  %v59_v24 = vld [vmem:[#allocation2] sm:$0xff]  ;;  %v113_v26 = vld [vmem:[#allocation4 + $0xb0] sm:$0xff] }
  0x17   :  { %86 = vmatpush.msra.mxu0 %v73_v5  ;;  %v114_v25 = vld [vmem:[#allocation4 + $0xb8] sm:$0xff]  ;;  %v112_v27 = vld [vmem:[#allocation4 + $0xa8] sm:$0xff]  ;;  %v111_v28 = vld [vmem:[#allocation4 + $0xa0] sm:$0xff] }
  0x18   :  { %132 = vmatpush.msra.mxu1 %v118_v11  ;;  %v110_v29 = vld [vmem:[#allocation4 + $0x98] sm:$0xff]  ;;  %v109_v30 = vld [vmem:[#allocation4 + $0x90] sm:$0xff]  ;;  %v108_v31 = vld [vmem:[#allocation4 + $0x88] sm:$0xff] }
  0x19   :  { %87 = vmatpush.msra.mxu0 %v72_v8  ;;  %v107_v32 = vld [vmem:[#allocation4 + $0x80] sm:$0xff]  ;;  %v168_v33 = vld [vmem:[#allocation4 + $0x178] sm:$0xff]  ;;  %v167_v34 = vld [vmem:[#allocation4 + $0x170] sm:$0xff] }
  0x1a   :  { %133 = vmatpush.msra.mxu1 %v117_v13  ;;  %174 = vmatpush.msra.mxu2 %v168_v33  ;;  %v166_v35 = vld [vmem:[#allocation4 + $0x168] sm:$0xff]  ;;  %v165_v36 = vld [vmem:[#allocation4 + $0x160] sm:$0xff]  ;;  %v164_v37 = vld [vmem:[#allocation4 + $0x158] sm:$0xff] }
  0x1b   :  { %88 = vmatpush.msra.mxu0 %v71_v10  ;;  %v163_v38 = vld [vmem:[#allocation4 + $0x150] sm:$0xff]  ;;  %v162_v39 = vld [vmem:[#allocation4 + $0x148] sm:$0xff]  ;;  %v161_v40 = vld [vmem:[#allocation4 + $0x140] sm:$0xff] }
  0x1c   :  { %134 = vmatpush.msra.mxu1 %v116_v15  ;;  %175 = vmatpush.msra.mxu2 %v167_v34  ;;  %v213_v41 = vld [vmem:[#allocation6] ss:$0 sm:$0xff]  ;;  %v160_v48 = vld [vmem:[#allocation4 + $0x138] sm:$0xff]  ;;  %v159_v49 = vld [vmem:[#allocation4 + $0x130] sm:$0xff] }
  0x1d   :  { %89 = vmatpush.msra.mxu0 %v70_v12  ;;  %v158_v50 = vld [vmem:[#allocation4 + $0x128] sm:$0xff]  ;;  %v157_v51 = vld [vmem:[#allocation4 + $0x120] sm:$0xff]  ;;  %v156_v52 = vld [vmem:[#allocation4 + $0x118] sm:$0xff] }
  0x1e   :  { %135 = vmatpush.msra.mxu1 %v115_v17  ;;  %176 = vmatpush.msra.mxu2 %v166_v35  ;;  %v155_v53 = vld [vmem:[#allocation4 + $0x110] sm:$0xff]  ;;  %v154_v54 = vld [vmem:[#allocation4 + $0x108] sm:$0xff]  ;;  %v153_v55 = vld [vmem:[#allocation4 + $0x100] sm:$0xff] }
  0x1f   :  { %90 = vmatpush.msra.mxu0 %v69_v14  ;;  %v214_v56 = vld [vmem:[#allocation6 + $0x1] ss:$0 sm:$0xff]  ;;  %v215_v63 = vld [vmem:[#allocation6 + $0x2] ss:$0 sm:$0xff] }
  0x20   :  { %136 = vmatpush.msra.mxu1 %v114_v25  ;;  %177 = vmatpush.msra.mxu2 %v165_v36 }
  0x21   :  { %91 = vmatpush.msra.mxu0 %v68_v16 }
  0x22   :  { %137 = vmatpush.msra.mxu1 %v113_v26  ;;  %178 = vmatpush.msra.mxu2 %v164_v37 }
  0x23   :  { %92 = vmatpush.msra.mxu0 %v67_v18 }
  0x24   :  { %138 = vmatpush.msra.mxu1 %v112_v27  ;;  %179 = vmatpush.msra.mxu2 %v163_v38 }
  0x25   :  { %93 = vmatpush.msra.mxu0 %v66_v19 }
  0x26   :  { %139 = vmatpush.msra.mxu1 %v111_v28  ;;  %180 = vmatpush.msra.mxu2 %v162_v39 }
  0x27   :  { %94 = vmatpush.msra.mxu0 %v65_v20 }
  0x28   :  { %140 = vmatpush.msra.mxu1 %v110_v29  ;;  %181 = vmatpush.msra.mxu2 %v161_v40 }
  0x29   :  { %95 = vmatpush.msra.mxu0 %v64_v21 }
  0x2a   :  { %141 = vmatpush.msra.mxu1 %v109_v30  ;;  %182 = vmatpush.msra.mxu2 %v160_v48 }
  0x2b   :  { %96 = vmatpush.msra.mxu0 %v63_v22 }
  0x2c   :  { %142 = vmatpush.msra.mxu1 %v108_v31  ;;  %183 = vmatpush.msra.mxu2 %v159_v49 }
  0x2d   :  { %97 = vmatpush.msra.mxu0 %v62_v23 }
  0x2e   :  { %205 = vmatmul.msk.f32.vlgmr.msra.gmra.mxu0 %vm60_vm0, %v59_v24  ;;  %143 = vmatpush.msra.mxu1 %v107_v32 }
  0x2f   :  { %184 = vmatpush.msra.mxu2 %v158_v50 }
  0x31   :  { %185 = vmatpush.msra.mxu2 %v157_v51 }
  0x33   :  { %186 = vmatpush.msra.mxu2 %v156_v52 }
  0x35   :  { %187 = vmatpush.msra.mxu2 %v155_v53 }
  0x37   :  { %188 = vmatpush.msra.mxu2 %v154_v54 }
  0x39   :  { %189 = vmatpush.msra.mxu2 %v153_v55 }
  0xab   :  { %v99_v42 = vpop.f32.mrf.mxu0 }
  0xac   :  { %v100_v43 = vadd.f32 %v213_v41, %v99_v42 }
  0xae   :  { %v102_v44 = vmul.f32 0.5, %v100_v43 }
  0xb0   :  { %216 = vtanh.f32 %v102_v44 }
  0xb6   :  { %v217_v45 = vpop.eup %216 }
  0xb7   :  { %v104_v46 = vmul.f32 0.5, %v217_v45 }
  0xb9   :  { %v105_v47 = vadd.f32 0.5, %v104_v46 }
  0xbb   :  { %144 = vmatmul.f32.vlgmr.msra.gmra.mxu1 %v105_v47 }
 0x138   :  { %v145_v57 = vpop.f32.mrf.mxu1 }
 0x139   :  { %v146_v58 = vadd.f32 %v214_v56, %v145_v57 }
 0x13b   :  { %v148_v59 = vmul.f32 0.5, %v146_v58 }
 0x13d   :  { %218 = vtanh.f32 %v148_v59 }
 0x143   :  { %v219_v60 = vpop.eup %218 }
 0x144   :  { %v150_v61 = vmul.f32 0.5, %v219_v60 }
 0x146   :  { %v151_v62 = vadd.f32 0.5, %v150_v61 }
 0x148   :  { %190 = vmatmul.f32.vlgmr.msra.gmra.mxu2 %v151_v62 }
 0x1cb   :  { %v191_v0 = vpop.f32.mrf.mxu2 }
 0x1cc   :  { %v192_v1 = vadd.f32 %v215_v63, %v191_v0 }
 0x1ce   :  { %v194_v2 = vmul.f32 0.5, %v192_v1 }
 0x1d0   :  { %220 = vtanh.f32 %v194_v2 }
 0x1d6   :  { %v221_v3 = vpop.eup %220 }
 0x1d7   :  { %v196_v4 = vmul.f32 0.5, %v221_v3 }
 0x1d9   :  { %v197_v5 = vadd.f32 0.5, %v196_v4 }
 0x1db   :  { %198 = vst [vmem:[%s340_s3] sm:$0xff] %v197_v5 }
 0x1dc   :  { %203 = vsyncpa [#allocation3], 1 }
 0x1dd   :  { %204 = vsyncpa [#allocation5], 1 }

</bundles_post_ra>
